<compile_context>
chip_gen: v5e
topology: v5e:2x2
jax: 0.10.0
libtpu: 0.0.40
codegen_flags: <defaults>
</compile_context>

<pallas_src>
import jax
import jax.numpy as jnp
from jax.experimental import pallas as pl
from jax.experimental.pallas import tpu as pltpu

LEAKY_SLOPE = 0.01   # nn.LeakyReLU() default
BN_EPS = 1e-5        # nn.BatchNorm2d default
_PADR = 8            # top pad rows so the data rows start sublane-aligned


# ----------------------------------------------------------------------------
# Fused kernel: pad (in VMEM) -> conv3x3+BN+LReLU -> conv3x3+BN+LReLU
# Activations are lane-folded: (Bt, H, W*C).
# ----------------------------------------------------------------------------
def _make_kernel(Bt, H, WCin, WC1, WC2):
    def _conv_bn_lrelu(src_ref, wb_ref, s_ref, b_ref, wcin, wcout):
        # One 3x3 conv == 3 banded matmuls (one per dy tap).  The banded weight
        # encodes the three dx taps and the zero padding along W, so each
        # operand is just a shifted row-slice of the H-padded scratch.
        acc = None
        for dy in range(3):                                    # static unroll
            r0 = _PADR - 1 + dy
            a = src_ref[:, r0:r0 + H, :].reshape(Bt * H, wcin)
            p = jnp.dot(a, wb_ref[dy], preferred_element_type=jnp.float32)
            acc = p if acc is None else acc + p
        y = acc * s_ref[0] + b_ref[0]                 # folded conv-bias + BN
        return jnp.where(y >= 0, y, LEAKY_SLOPE * y)  # LeakyReLU

    def kernel(x_ref, wb1_ref, s1_ref, b1_ref, wb2_ref, s2_ref, b2_ref,
               o_ref, xpad_ref, hpad_ref):
        # Halo-only zeroing: the data rows [_PADR, _PADR+H) are fully
        # overwritten every step, so only the single halo row above/below them
        # must be (re)zeroed.  Re-zero every step: with a "parallel" batch axis
        # each TensorCore owns its own scratch instance, so gating on
        # program_id == 0 would be wrong.
        zx = jnp.zeros((Bt, 1, WCin), xpad_ref.dtype)
        zh = jnp.zeros((Bt, 1, WC1), hpad_ref.dtype)
        xpad_ref[:, _PADR - 1:_PADR, :] = zx
        xpad_ref[:, _PADR + H:_PADR + H + 1, :] = zx
        hpad_ref[:, _PADR - 1:_PADR, :] = zh
        hpad_ref[:, _PADR + H:_PADR + H + 1, :] = zh

        # Sublane-aligned interior fill (row _PADR is a tile boundary).
        xpad_ref[:, _PADR:_PADR + H, :] = x_ref[...]

        # conv1 -> BN -> LeakyReLU; block-1 activation stays resident in VMEM.
        y1 = _conv_bn_lrelu(xpad_ref, wb1_ref, s1_ref, b1_ref, WCin, WC1)
        hpad_ref[:, _PADR:_PADR + H, :] = (
            y1.reshape(Bt, H, WC1).astype(hpad_ref.dtype))

        # conv2 -> BN -> LeakyReLU; lane-dense output store.
        y2 = _conv_bn_lrelu(hpad_ref, wb2_ref, s2_ref, b2_ref, WC1, WC2)
        o_ref[...] = y2.reshape(Bt, H, WC2).astype(o_ref.dtype)

    return kernel


# ----------------------------------------------------------------------------
# Wrapper helpers
# ----------------------------------------------------------------------------
def _band_weights(w_hwio, W):
    """(3,3,Cin,Cout) HWIO kernel -> (3, W*Cin, W*Cout) block-banded weights.

    band[dy] block (w_in, w_out) = K[dy, dx] with dx = w_in - w_out + 1 (zero
    outside the band), i.e. the three dx taps of a stride-1 pad-1 conv along W
    with implicit zero padding at the W boundaries.
    """
    bands = []
    for dy in range(3):
        m = None
        for dx in range(3):
            blk = jnp.kron(jnp.eye(W, k=1 - dx, dtype=jnp.float32),
                           w_hwio[dy, dx].astype(jnp.float32))
            m = blk if m is None else m + blk
        bands.append(m)
    return jnp.stack(bands)            # (3, W*Cin, W*Cout) f32


def _pick_batch_tile(B, H):
    # Batch items per grid step: grow the matmul M dim (Bt*H rows) while
    # keeping >= 2 grid steps (pipeline overlap; feeds both v7x TensorCores)
    # and layout-trivial (Bt,H,WC)->(Bt*H,WC) collapsing (H multiple of 8).
    if H % 8 != 0:
        return 1
    best = 1
    for bt in range(1, B + 1):
        if B % bt:
            continue
        if B > 1 and B // bt < 2:
            continue
        if bt * H > 1024:              # diminishing MXU returns past ~1k rows
            continue
        best = bt
    return best


def _vmem_limit_bytes(Bt, H, WCin, WC1, WC2, out_itemsize):
    rows = _PADR + H + 1
    x_blk = 2 * Bt * H * WCin * 2                   # double-buffered bf16 input
    o_blk = 2 * Bt * H * WC2 * out_itemsize         # double-buffered output
    wgt = (3 * WCin * WC1 + 3 * WC1 * WC2) * 2      # single-buffered bf16 weights
    affine = 2 * (WC1 + WC2) * 4
    scr = Bt * rows * (WCin + WC1) * 2              # padded bf16 scratches
    live = 2 * Bt * H * (WC1 + WC2) * 4             # f32 accumulators + temps
    need = x_blk + o_blk + wgt + affine + scr + live + (4 << 20)
    try:
        cap = int(pltpu.get_tpu_info().vmem_capacity_bytes)
    except Exception:
        cap = 64 << 20                              # v7x-safe fallback
    return int(min(max(need, 32 << 20), int(cap * 0.85)))


def fused_double_conv(f_nhwc, w1_hwio, s1, b1, w2_hwio, s2, b2, out_dtype):
    """[conv3x3(pad=1) + BN + LeakyReLU] x 2 on an NHWC input, one pallas_call."""
    B, H, W, Cin = (int(d) for d in f_nhwc.shape)
    C1, C2 = int(w1_hwio.shape[-1]), int(w2_hwio.shape[-1])
    WCin, WC1, WC2 = W * Cin, W * C1, W * C2
    out_itemsize = jnp.dtype(out_dtype).itemsize

    # Lane-folded bf16 input and banded bf16 weights (MXU-native operands).
    x_folded = f_nhwc.astype(jnp.bfloat16).reshape(B, H, WCin)
    wb1 = _band_weights(w1_hwio, W).astype(jnp.bfloat16)       # (3, WCin, WC1)
    wb2 = _band_weights(w2_hwio, W).astype(jnp.bfloat16)       # (3, WC1, WC2)
    # Folded BN affine, tiled across W to match the folded lane axis (f32).
    s1t = jnp.tile(s1.astype(jnp.float32), W).reshape(1, WC1)
    b1t = jnp.tile(b1.astype(jnp.float32), W).reshape(1, WC1)
    s2t = jnp.tile(s2.astype(jnp.float32), W).reshape(1, WC2)
    b2t = jnp.tile(b2.astype(jnp.float32), W).reshape(1, WC2)

    Bt = _pick_batch_tile(B, H)
    grid = (B // Bt,)

    def _const_spec(shape):
        # Constant block index across the grid -> single-buffer it (saves VMEM).
        return pl.BlockSpec(shape, lambda b: (0,) * len(shape),
                            pipeline_mode=pl.Buffered(1))

    cost = pl.CostEstimate(
        flops=2 * B * H * W * 9 * (Cin * C1 + C1 * C2),
        transcendentals=0,
        bytes_accessed=(B * H * WCin * 2
                        + 3 * (WCin * WC1 + WC1 * WC2) * 2
                        + B * H * WC2 * out_itemsize))

    out_folded = pl.pallas_call(
        _make_kernel(Bt, H, WCin, WC1, WC2),
        out_shape=jax.ShapeDtypeStruct((B, H, WC2), out_dtype),
        grid=grid,
        in_specs=[
            pl.BlockSpec((Bt, H, WCin), lambda b: (b, 0, 0)),
            _const_spec((3, WCin, WC1)),
            _const_spec((1, WC1)),
            _const_spec((1, WC1)),
            _const_spec((3, WC1, WC2)),
            _const_spec((1, WC2)),
            _const_spec((1, WC2)),
        ],
        out_specs=pl.BlockSpec((Bt, H, WC2), lambda b: (b, 0, 0)),
        scratch_shapes=[
            pltpu.VMEM((Bt, _PADR + H + 1, WCin), jnp.bfloat16),  # padded input
            pltpu.VMEM((Bt, _PADR + H + 1, WC1), jnp.bfloat16),   # padded act-1
        ],
        compiler_params=pltpu.CompilerParams(
            dimension_semantics=("parallel",),
            vmem_limit_bytes=_vmem_limit_bytes(Bt, H, WCin, WC1, WC2,
                                               out_itemsize)),
        cost_estimate=cost,
    )(x_folded, wb1, s1t, b1t, wb2, s2t, b2t)

    return out_folded.reshape(B, H, W, C2)


# ----------------------------------------------------------------------------
# Plain-JAX glue: bilinear upsample (align_corners=True), BN folding, params.
# ----------------------------------------------------------------------------
def _bilinear_upsample_align_corners(x_nhwc, out_h, out_w):
    B, H, W, C = x_nhwc.shape

    def coords(out_size, in_size):
        if out_size == 1:
            return jnp.zeros((1,), jnp.float32)
        return jnp.arange(out_size, dtype=jnp.float32) * (in_size - 1) / (out_size - 1)

    yc = coords(out_h, H)
    xc = coords(out_w, W)
    y0 = jnp.floor(yc).astype(jnp.int32)
    y1 = jnp.minimum(y0 + 1, H - 1)
    wy = (yc - y0.astype(jnp.float32))[None, :, None, None]
    x0 = jnp.floor(xc).astype(jnp.int32)
    x1 = jnp.minimum(x0 + 1, W - 1)
    wx = (xc - x0.astype(jnp.float32))[None, None, :, None]

    rows0 = jnp.take(x_nhwc, y0, axis=1)
    rows1 = jnp.take(x_nhwc, y1, axis=1)
    top = jnp.take(rows0, x0, axis=2) * (1 - wx) + jnp.take(rows0, x1, axis=2) * wx
    bot = jnp.take(rows1, x0, axis=2) * (1 - wx) + jnp.take(rows1, x1, axis=2) * wx
    return top * (1 - wy) + bot * wy


def _fold_bn(p):
    scale = p["gamma"] / jnp.sqrt(p["running_var"] + BN_EPS)
    bias = (p["conv_b"] - p["running_mean"]) * scale + p["beta"]
    return scale, bias


def init_upsample_bn_params(key, in_channels, out_channels):
    """Deterministic synthetic parameters (shapes per UpSampleBN.__init__)."""
    ks = jax.random.split(key, 12)

    def conv_block(kw, kb, kg, kbe, km, kv, cin, cout):
        return dict(
            w=jax.random.normal(kw, (3, 3, cin, cout), jnp.float32) * 0.1,   # HWIO
            conv_b=jax.random.normal(kb, (cout,), jnp.float32) * 0.1,
            gamma=1.0 + 0.1 * jax.random.normal(kg, (cout,), jnp.float32),
            beta=0.1 * jax.random.normal(kbe, (cout,), jnp.float32),
            running_mean=0.1 * jax.random.normal(km, (cout,), jnp.float32),
            running_var=jnp.abs(1.0 + 0.1 * jax.random.normal(kv, (cout,), jnp.float32)),
        )

    return dict(
        block1=conv_block(*ks[0:6], in_channels, out_channels),
        block2=conv_block(*ks[6:12], out_channels, out_channels),
    )


def _prepare_input(x_nchw, concat_with_nchw):
    """NCHW -> NHWC f32 input of the conv stack (upsample + channel concat)."""
    x = jnp.transpose(x_nchw, (0, 2, 3, 1)).astype(jnp.float32)
    if concat_with_nchw is None:
        return x
    cw = jnp.transpose(concat_with_nchw, (0, 2, 3, 1)).astype(jnp.float32)
    up = _bilinear_upsample_align_corners(x, cw.shape[1], cw.shape[2])
    return jnp.concatenate([up, cw], axis=-1)


@jax.jit
def upsample_bn_forward(params, x_nchw, concat_with_nchw=None):
    """Matches UpSampleBN.forward.  Inputs/outputs are NCHW like PyTorch."""
    f = _prepare_input(x_nchw, concat_with_nchw)
    s1, b1 = _fold_bn(params["block1"])
    s2, b2 = _fold_bn(params["block2"])
    out_nhwc = fused_double_conv(
        f, params["block1"]["w"], s1, b1,
        params["block2"]["w"], s2, b2, out_dtype=x_nchw.dtype)
    return jnp.transpose(out_nhwc, (0, 3, 1, 2))


# ----------------------------------------------------------------------------
# Pure-JAX reference (mirrors the kernel's precision policy) for validation.
# ----------------------------------------------------------------------------
def _reference_forward(params, f_nhwc, out_dtype):
    def block(x, p):
        s, b = _fold_bn(p)
        w = p["w"].astype(jnp.bfloat16).astype(jnp.float32)
        y = jax.lax.conv_general_dilated(
            x, w, window_strides=(1, 1), padding=((1, 1), (1, 1)),
            dimension_numbers=("NHWC", "HWIO", "NHWC"),
            precision=jax.lax.Precision.HIGHEST)
        y = y * s + b
        return jnp.where(y >= 0, y, LEAKY_SLOPE * y)

    f = f_nhwc.astype(jnp.bfloat16).astype(jnp.float32)
    h = block(f, params["block1"])
    h = h.astype(jnp.bfloat16).astype(jnp.float32)   # kernel keeps it in bf16 VMEM
    h = block(h, params["block2"])
    return jnp.transpose(h, (0, 3, 1, 2)).astype(out_dtype)


if __name__ == "__main__":
    key = jax.random.PRNGKey(0)
    k_x, k_c, k_p, k_p2 = jax.random.split(key, 4)

    # x: (B=2, C=4, H=8, W=8); concat_with: (B=2, C=4, H=16, W=16) -> in_channels = 8.
    x = jax.random.normal(k_x, (2, 4, 8, 8), jnp.float32)
    concat_with = jax.random.normal(k_c, (2, 4, 16, 16), jnp.float32)
    in_channels, out_channels = 4 + 4, 8
    params = init_upsample_bn_params(k_p, in_channels, out_channels)

    # Path 1: bilinear upsample + concat + fused double conv block.
    out = upsample_bn_forward(params, x, concat_with)
    jax.block_until_ready(out)
    assert out.shape == (2, out_channels, 16, 16), out.shape
    assert jnp.isfinite(out).all()
    ref = _reference_forward(params, _prepare_input(x, concat_with), out.dtype)
    err = float(jnp.max(jnp.abs(out.astype(jnp.float32) - ref.astype(jnp.float32))))
    assert err < 5e-2, f"concat path: max |pallas - ref| = {err}"

    # Path 2: no concat (f = x).
    params2 = init_upsample_bn_params(k_p2, 4, out_channels)
    out2 = upsample_bn_forward(params2, concat_with, None)
    jax.block_until_ready(out2)
    assert out2.shape == (2, out_channels, 16, 16), out2.shape
    ref2 = _reference_forward(params2, _prepare_input(concat_with, None), out2.dtype)
    err2 = float(jnp.max(jnp.abs(out2.astype(jnp.float32) - ref2.astype(jnp.float32))))
    assert err2 < 5e-2, f"no-concat path: max |pallas - ref| = {err2}"

    print("KERNEL_OK")
</pallas_src>

<mosaic_0001>
module attributes {stable_mosaic.version = 11 : i64} {
  func.func @kernel(%arg0: i32, %arg1: memref<1x16x128xbf16, #tpu.memory_space<vmem>>, %arg2: memref<3x128x128xbf16, #tpu.memory_space<vmem>>, %arg3: memref<1x128xf32, #tpu.memory_space<vmem>>, %arg4: memref<1x128xf32, #tpu.memory_space<vmem>>, %arg5: memref<3x128x128xbf16, #tpu.memory_space<vmem>>, %arg6: memref<1x128xf32, #tpu.memory_space<vmem>>, %arg7: memref<1x128xf32, #tpu.memory_space<vmem>>, %arg8: memref<1x16x128xf32, #tpu.memory_space<vmem>>, %arg9: memref<1x25x128xbf16, #tpu.memory_space<vmem>>, %arg10: memref<1x25x128xbf16, #tpu.memory_space<vmem>>) attributes {dimension_semantics = [#tpu.dimension_semantics<parallel>], iteration_bounds = array<i64: 2>, scalar_prefetch = 0 : i64, scratch_operands = 2 : i64, tpu.core_type = #tpu.core_type<tc>, window_params = [{transform_indices = @transform_0, window_bounds = array<i64: 1, 16, 128>}, {pipeline_mode = #tpu.pipeline_mode<synchronous>, transform_indices = @transform_1, window_bounds = array<i64: 3, 128, 128>}, {pipeline_mode = #tpu.pipeline_mode<synchronous>, transform_indices = @transform_2, window_bounds = array<i64: 1, 128>}, {pipeline_mode = #tpu.pipeline_mode<synchronous>, transform_indices = @transform_3, window_bounds = array<i64: 1, 128>}, {pipeline_mode = #tpu.pipeline_mode<synchronous>, transform_indices = @transform_4, window_bounds = array<i64: 3, 128, 128>}, {pipeline_mode = #tpu.pipeline_mode<synchronous>, transform_indices = @transform_5, window_bounds = array<i64: 1, 128>}, {pipeline_mode = #tpu.pipeline_mode<synchronous>, transform_indices = @transform_6, window_bounds = array<i64: 1, 128>}, {transform_indices = @transform_7, window_bounds = array<i64: 1, 16, 128>}]} {
    %cst = arith.constant 0.000000e+00 : bf16
    %0 = vector.broadcast %cst : bf16 to vector<1x1x128xbf16>
    %cst_0 = arith.constant 0.000000e+00 : bf16
    %1 = vector.broadcast %cst_0 : bf16 to vector<1x1x128xbf16>
    %c0 = arith.constant 0 : index
    %c7 = arith.constant 7 : index
    %c0_1 = arith.constant 0 : index
    %2 = vector.load %arg9[%c0, %c7, %c0_1] : memref<1x25x128xbf16, #tpu.memory_space<vmem>>, vector<1x1x128xbf16>
    tpu.vector_store %arg9[%c0, %c7, %c0_1], %0 {strides = array<i32>} : memref<1x25x128xbf16, #tpu.memory_space<vmem>>, vector<1x1x128xbf16>,
    %c0_2 = arith.constant 0 : index
    %c24 = arith.constant 24 : index
    %c0_3 = arith.constant 0 : index
    %3 = vector.load %arg9[%c0_2, %c24, %c0_3] : memref<1x25x128xbf16, #tpu.memory_space<vmem>>, vector<1x1x128xbf16>
    tpu.vector_store %arg9[%c0_2, %c24, %c0_3], %0 {strides = array<i32>} : memref<1x25x128xbf16, #tpu.memory_space<vmem>>, vector<1x1x128xbf16>,
    %c0_4 = arith.constant 0 : index
    %c7_5 = arith.constant 7 : index
    %c0_6 = arith.constant 0 : index
    %4 = vector.load %arg10[%c0_4, %c7_5, %c0_6] : memref<1x25x128xbf16, #tpu.memory_space<vmem>>, vector<1x1x128xbf16>
    tpu.vector_store %arg10[%c0_4, %c7_5, %c0_6], %1 {strides = array<i32>} : memref<1x25x128xbf16, #tpu.memory_space<vmem>>, vector<1x1x128xbf16>,
    %c0_7 = arith.constant 0 : index
    %c24_8 = arith.constant 24 : index
    %c0_9 = arith.constant 0 : index
    %5 = vector.load %arg10[%c0_7, %c24_8, %c0_9] : memref<1x25x128xbf16, #tpu.memory_space<vmem>>, vector<1x1x128xbf16>
    tpu.vector_store %arg10[%c0_7, %c24_8, %c0_9], %1 {strides = array<i32>} : memref<1x25x128xbf16, #tpu.memory_space<vmem>>, vector<1x1x128xbf16>,
    %c0_10 = arith.constant 0 : index
    %c0_11 = arith.constant 0 : index
    %c0_12 = arith.constant 0 : index
    %6 = vector.load %arg1[%c0_10, %c0_11, %c0_12] : memref<1x16x128xbf16, #tpu.memory_space<vmem>>, vector<1x16x128xbf16>
    %c0_13 = arith.constant 0 : index
    %c8 = arith.constant 8 : index
    %c0_14 = arith.constant 0 : index
    %7 = vector.load %arg9[%c0_13, %c8, %c0_14] : memref<1x25x128xbf16, #tpu.memory_space<vmem>>, vector<1x16x128xbf16>
    tpu.vector_store %arg9[%c0_13, %c8, %c0_14], %6 {strides = array<i32>} : memref<1x25x128xbf16, #tpu.memory_space<vmem>>, vector<1x16x128xbf16>,
    %c0_15 = arith.constant 0 : index
    %c7_16 = arith.constant 7 : index
    %c0_17 = arith.constant 0 : index
    %8 = vector.load %arg9[%c0_15, %c7_16, %c0_17] : memref<1x25x128xbf16, #tpu.memory_space<vmem>>, vector<1x16x128xbf16>
    %9 = vector.shape_cast %8 : vector<1x16x128xbf16> to vector<16x128xbf16>
    %c0_18 = arith.constant 0 : index
    %c0_19 = arith.constant 0 : index
    %c0_20 = arith.constant 0 : index
    %10 = vector.load %arg2[%c0_18, %c0_19, %c0_20] : memref<3x128x128xbf16, #tpu.memory_space<vmem>>, vector<1x128x128xbf16>
    %11 = vector.shape_cast %10 : vector<1x128x128xbf16> to vector<128x128xbf16>
    %cst_21 = arith.constant dense<0.000000e+00> : vector<16x128xf32>
    %12 = tpu.matmul %9, %11, %cst_21 {dimension_numbers = #tpu.dot_dimension_numbers<[1], [0], [0], [1], [0, 0, 1, 1], [], []>} : vector<16x128xbf16>, vector<128x128xbf16>, vector<16x128xf32> -> vector<16x128xf32>
    %c0_22 = arith.constant 0 : index
    %c8_23 = arith.constant 8 : index
    %c0_24 = arith.constant 0 : index
    %13 = vector.load %arg9[%c0_22, %c8_23, %c0_24] : memref<1x25x128xbf16, #tpu.memory_space<vmem>>, vector<1x16x128xbf16>
    %14 = vector.shape_cast %13 : vector<1x16x128xbf16> to vector<16x128xbf16>
    %c1 = arith.constant 1 : index
    %c0_25 = arith.constant 0 : index
    %c0_26 = arith.constant 0 : index
    %15 = vector.load %arg2[%c1, %c0_25, %c0_26] : memref<3x128x128xbf16, #tpu.memory_space<vmem>>, vector<1x128x128xbf16>
    %16 = vector.shape_cast %15 : vector<1x128x128xbf16> to vector<128x128xbf16>
    %cst_27 = arith.constant dense<0.000000e+00> : vector<16x128xf32>
    %17 = tpu.matmul %14, %16, %cst_27 {dimension_numbers = #tpu.dot_dimension_numbers<[1], [0], [0], [1], [0, 0, 1, 1], [], []>} : vector<16x128xbf16>, vector<128x128xbf16>, vector<16x128xf32> -> vector<16x128xf32>
    %18 = arith.addf %12, %17 : vector<16x128xf32>
    %c0_28 = arith.constant 0 : index
    %c9 = arith.constant 9 : index
    %c0_29 = arith.constant 0 : index
    %19 = vector.load %arg9[%c0_28, %c9, %c0_29] : memref<1x25x128xbf16, #tpu.memory_space<vmem>>, vector<1x16x128xbf16>
    %20 = vector.shape_cast %19 : vector<1x16x128xbf16> to vector<16x128xbf16>
    %c2 = arith.constant 2 : index
    %c0_30 = arith.constant 0 : index
    %c0_31 = arith.constant 0 : index
    %21 = vector.load %arg2[%c2, %c0_30, %c0_31] : memref<3x128x128xbf16, #tpu.memory_space<vmem>>, vector<1x128x128xbf16>
    %22 = vector.shape_cast %21 : vector<1x128x128xbf16> to vector<128x128xbf16>
    %cst_32 = arith.constant dense<0.000000e+00> : vector<16x128xf32>
    %23 = tpu.matmul %20, %22, %cst_32 {dimension_numbers = #tpu.dot_dimension_numbers<[1], [0], [0], [1], [0, 0, 1, 1], [], []>} : vector<16x128xbf16>, vector<128x128xbf16>, vector<16x128xf32> -> vector<16x128xf32>
    %24 = arith.addf %18, %23 : vector<16x128xf32>
    %c0_33 = arith.constant 0 : index
    %c0_34 = arith.constant 0 : index
    %25 = vector.load %arg3[%c0_33, %c0_34] : memref<1x128xf32, #tpu.memory_space<vmem>>, vector<1x128xf32>
    %26 = vector.shape_cast %25 : vector<1x128xf32> to vector<128xf32>
    %27 = vector.shape_cast %26 : vector<128xf32> to vector<1x128xf32>
    %28 = vector.broadcast %27 : vector<1x128xf32> to vector<16x128xf32>
    %29 = arith.mulf %24, %28 : vector<16x128xf32>
    %c0_35 = arith.constant 0 : index
    %c0_36 = arith.constant 0 : index
    %30 = vector.load %arg4[%c0_35, %c0_36] : memref<1x128xf32, #tpu.memory_space<vmem>>, vector<1x128xf32>
    %31 = vector.shape_cast %30 : vector<1x128xf32> to vector<128xf32>
    %32 = vector.shape_cast %31 : vector<128xf32> to vector<1x128xf32>
    %33 = vector.broadcast %32 : vector<1x128xf32> to vector<16x128xf32>
    %34 = arith.addf %29, %33 : vector<16x128xf32>
    %cst_37 = arith.constant 0.000000e+00 : f32
    %35 = vector.broadcast %cst_37 : f32 to vector<16x128xf32>
    %36 = arith.cmpf oge, %34, %35 : vector<16x128xf32>
    %cst_38 = arith.constant 0.00999999977 : f32
    %37 = vector.broadcast %cst_38 : f32 to vector<16x128xf32>
    %38 = arith.mulf %37, %34 : vector<16x128xf32>
    %39 = arith.select %36, %34, %38 : vector<16x128xi1>, vector<16x128xf32>
    %40 = vector.shape_cast %39 : vector<16x128xf32> to vector<1x16x128xf32>
    %41 = arith.truncf %40 : vector<1x16x128xf32> to vector<1x16x128xbf16>
    %c0_39 = arith.constant 0 : index
    %c8_40 = arith.constant 8 : index
    %c0_41 = arith.constant 0 : index
    %42 = vector.load %arg10[%c0_39, %c8_40, %c0_41] : memref<1x25x128xbf16, #tpu.memory_space<vmem>>, vector<1x16x128xbf16>
    tpu.vector_store %arg10[%c0_39, %c8_40, %c0_41], %41 {strides = array<i32>} : memref<1x25x128xbf16, #tpu.memory_space<vmem>>, vector<1x16x128xbf16>,
    %c0_42 = arith.constant 0 : index
    %c7_43 = arith.constant 7 : index
    %c0_44 = arith.constant 0 : index
    %43 = vector.load %arg10[%c0_42, %c7_43, %c0_44] : memref<1x25x128xbf16, #tpu.memory_space<vmem>>, vector<1x16x128xbf16>
    %44 = vector.shape_cast %43 : vector<1x16x128xbf16> to vector<16x128xbf16>
    %c0_45 = arith.constant 0 : index
    %c0_46 = arith.constant 0 : index
    %c0_47 = arith.constant 0 : index
    %45 = vector.load %arg5[%c0_45, %c0_46, %c0_47] : memref<3x128x128xbf16, #tpu.memory_space<vmem>>, vector<1x128x128xbf16>
    %46 = vector.shape_cast %45 : vector<1x128x128xbf16> to vector<128x128xbf16>
    %cst_48 = arith.constant dense<0.000000e+00> : vector<16x128xf32>
    %47 = tpu.matmul %44, %46, %cst_48 {dimension_numbers = #tpu.dot_dimension_numbers<[1], [0], [0], [1], [0, 0, 1, 1], [], []>} : vector<16x128xbf16>, vector<128x128xbf16>, vector<16x128xf32> -> vector<16x128xf32>
    %c0_49 = arith.constant 0 : index
    %c8_50 = arith.constant 8 : index
    %c0_51 = arith.constant 0 : index
    %48 = vector.load %arg10[%c0_49, %c8_50, %c0_51] : memref<1x25x128xbf16, #tpu.memory_space<vmem>>, vector<1x16x128xbf16>
    %49 = vector.shape_cast %48 : vector<1x16x128xbf16> to vector<16x128xbf16>
    %c1_52 = arith.constant 1 : index
    %c0_53 = arith.constant 0 : index
    %c0_54 = arith.constant 0 : index
    %50 = vector.load %arg5[%c1_52, %c0_53, %c0_54] : memref<3x128x128xbf16, #tpu.memory_space<vmem>>, vector<1x128x128xbf16>
    %51 = vector.shape_cast %50 : vector<1x128x128xbf16> to vector<128x128xbf16>
    %cst_55 = arith.constant dense<0.000000e+00> : vector<16x128xf32>
    %52 = tpu.matmul %49, %51, %cst_55 {dimension_numbers = #tpu.dot_dimension_numbers<[1], [0], [0], [1], [0, 0, 1, 1], [], []>} : vector<16x128xbf16>, vector<128x128xbf16>, vector<16x128xf32> -> vector<16x128xf32>
    %53 = arith.addf %47, %52 : vector<16x128xf32>
    %c0_56 = arith.constant 0 : index
    %c9_57 = arith.constant 9 : index
    %c0_58 = arith.constant 0 : index
    %54 = vector.load %arg10[%c0_56, %c9_57, %c0_58] : memref<1x25x128xbf16, #tpu.memory_space<vmem>>, vector<1x16x128xbf16>
    %55 = vector.shape_cast %54 : vector<1x16x128xbf16> to vector<16x128xbf16>
    %c2_59 = arith.constant 2 : index
    %c0_60 = arith.constant 0 : index
    %c0_61 = arith.constant 0 : index
    %56 = vector.load %arg5[%c2_59, %c0_60, %c0_61] : memref<3x128x128xbf16, #tpu.memory_space<vmem>>, vector<1x128x128xbf16>
    %57 = vector.shape_cast %56 : vector<1x128x128xbf16> to vector<128x128xbf16>
    %cst_62 = arith.constant dense<0.000000e+00> : vector<16x128xf32>
    %58 = tpu.matmul %55, %57, %cst_62 {dimension_numbers = #tpu.dot_dimension_numbers<[1], [0], [0], [1], [0, 0, 1, 1], [], []>} : vector<16x128xbf16>, vector<128x128xbf16>, vector<16x128xf32> -> vector<16x128xf32>
    %59 = arith.addf %53, %58 : vector<16x128xf32>
    %c0_63 = arith.constant 0 : index
    %c0_64 = arith.constant 0 : index
    %60 = vector.load %arg6[%c0_63, %c0_64] : memref<1x128xf32, #tpu.memory_space<vmem>>, vector<1x128xf32>
    %61 = vector.shape_cast %60 : vector<1x128xf32> to vector<128xf32>
    %62 = vector.shape_cast %61 : vector<128xf32> to vector<1x128xf32>
    %63 = vector.broadcast %62 : vector<1x128xf32> to vector<16x128xf32>
    %64 = arith.mulf %59, %63 : vector<16x128xf32>
    %c0_65 = arith.constant 0 : index
    %c0_66 = arith.constant 0 : index
    %65 = vector.load %arg7[%c0_65, %c0_66] : memref<1x128xf32, #tpu.memory_space<vmem>>, vector<1x128xf32>
    %66 = vector.shape_cast %65 : vector<1x128xf32> to vector<128xf32>
    %67 = vector.shape_cast %66 : vector<128xf32> to vector<1x128xf32>
    %68 = vector.broadcast %67 : vector<1x128xf32> to vector<16x128xf32>
    %69 = arith.addf %64, %68 : vector<16x128xf32>
    %cst_67 = arith.constant 0.000000e+00 : f32
    %70 = vector.broadcast %cst_67 : f32 to vector<16x128xf32>
    %71 = arith.cmpf oge, %69, %70 : vector<16x128xf32>
    %cst_68 = arith.constant 0.00999999977 : f32
    %72 = vector.broadcast %cst_68 : f32 to vector<16x128xf32>
    %73 = arith.mulf %72, %69 : vector<16x128xf32>
    %74 = arith.select %71, %69, %73 : vector<16x128xi1>, vector<16x128xf32>
    %75 = vector.shape_cast %74 : vector<16x128xf32> to vector<1x16x128xf32>
    %c0_69 = arith.constant 0 : index
    %c0_70 = arith.constant 0 : index
    %c0_71 = arith.constant 0 : index
    %76 = vector.load %arg8[%c0_69, %c0_70, %c0_71] : memref<1x16x128xf32, #tpu.memory_space<vmem>>, vector<1x16x128xf32>
    tpu.vector_store %arg8[%c0_69, %c0_70, %c0_71], %75 {strides = array<i32>} : memref<1x16x128xf32, #tpu.memory_space<vmem>>, vector<1x16x128xf32>,
    return
  }
  func.func @transform_0(%arg0: i32) -> (i32, i32, i32) {
    %c0_i32 = arith.constant 0 : i32
    %c0_i32_0 = arith.constant 0 : i32
    %c0_i32_1 = arith.constant 0 : i32
    return %arg0, %c0_i32, %c0_i32_0 : i32, i32, i32
  }
  func.func @transform_1(%arg0: i32) -> (i32, i32, i32) {
    %c0_i32 = arith.constant 0 : i32
    %c0_i32_0 = arith.constant 0 : i32
    %c0_i32_1 = arith.constant 0 : i32
    %c0_i32_2 = arith.constant 0 : i32
    return %c0_i32, %c0_i32_0, %c0_i32_1 : i32, i32, i32
  }
  func.func @transform_2(%arg0: i32) -> (i32, i32) {
    %c0_i32 = arith.constant 0 : i32
    %c0_i32_0 = arith.constant 0 : i32
    %c0_i32_1 = arith.constant 0 : i32
    return %c0_i32, %c0_i32_0 : i32, i32
  }
  func.func @transform_3(%arg0: i32) -> (i32, i32) {
    %c0_i32 = arith.constant 0 : i32
    %c0_i32_0 = arith.constant 0 : i32
    %c0_i32_1 = arith.constant 0 : i32
    return %c0_i32, %c0_i32_0 : i32, i32
  }
  func.func @transform_4(%arg0: i32) -> (i32, i32, i32) {
    %c0_i32 = arith.constant 0 : i32
    %c0_i32_0 = arith.constant 0 : i32
    %c0_i32_1 = arith.constant 0 : i32
    %c0_i32_2 = arith.constant 0 : i32
    return %c0_i32, %c0_i32_0, %c0_i32_1 : i32, i32, i32
  }
  func.func @transform_5(%arg0: i32) -> (i32, i32) {
    %c0_i32 = arith.constant 0 : i32
    %c0_i32_0 = arith.constant 0 : i32
    %c0_i32_1 = arith.constant 0 : i32
    return %c0_i32, %c0_i32_0 : i32, i32
  }
  func.func @transform_6(%arg0: i32) -> (i32, i32) {
    %c0_i32 = arith.constant 0 : i32
    %c0_i32_0 = arith.constant 0 : i32
    %c0_i32_1 = arith.constant 0 : i32
    return %c0_i32, %c0_i32_0 : i32, i32
  }
  func.func @transform_7(%arg0: i32) -> (i32, i32, i32) {
    %c0_i32 = arith.constant 0 : i32
    %c0_i32_0 = arith.constant 0 : i32
    %c0_i32_1 = arith.constant 0 : i32
    return %arg0, %c0_i32, %c0_i32_0 : i32, i32, i32
  }
}

</mosaic_0001>

<bundles_post_ra>
// kernel: tile.23
= control target key start
LH: loop header
LB: loop body
LE: loop exit
PB: predicated region body
PF: predicated region fallthrough
CT: control target
= control target key end

     0   :  { %s28_s0 = inlined_call_operand.vmem [shape: f32[8], index: 0, kind: input, shape index: {}]   ;;  %s29_s1 = inlined_call_operand.vmem [shape: f32[16,8], index: 1, kind: output, shape index: {}]  }
   0x1   :  { %v4_v0 = vld [vmem:[%s28_s0] ss:$0 sm:$0xff] }
   0x2   :  { %5 = vst [vmem:[%s29_s1] sm:$0xff] %v4_v0 }
   0x3   :  { %8 = vst [vmem:[%s29_s1 + $0x8] sm:$0xff] %v4_v0 }

// kernel: tile.24
= control target key start
LH: loop header
LB: loop body
LE: loop exit
PB: predicated region body
PF: predicated region fallthrough
CT: control target
= control target key end

     0   :  { %s131_s10 = smov 120   ;;  %s132_s11 = smov 104   ;;  %vm3_vm0 = vcmask 64512   ;;  %vm9_vm1 = vcmask 1048512   ;;  %vm15_vm2 = vcmask 982912   ;;  %vm21_vm3 = vcmask 917312   ;;  %s207_s0 = inlined_call_operand.vmem [shape: f32[16,8], index: 0, kind: input, shape index: {}]   ;;  %s208_s1 = inlined_call_operand.vmem [shape: f32[1,128], index: 1, kind: output, shape index: {}]  }
   0x1   :  { %v101_v0 = vld [vmem:[%s207_s0 + $0xf] sm:$0x1]   ;;  %v103_v1 = vld [vmem:[%s207_s0 + $0xd] sm:$0x1]   ;;  %v105_v2 = vld [vmem:[%s207_s0 + $0xb] sm:$0x1]  }
   0x2   :  { %7 = vrot.lane.b32.xlu0 %v101_v0, %s131_s10  ;;  %19 = vrot.lane.b32.xlu1 %v103_v1, %s132_s11  ;;  %s133_s14 = smov 88   ;;  %v102_v3 = vld [vmem:[%s207_s0 + $0xe] sm:$0x1]   ;;  %v104_v4 = vld [vmem:[%s207_s0 + $0xc] sm:$0x1]   ;;  %s134_s19 = smov 112  }
   0x3   :  { %31 = vrot.lane.b32.xlu2 %v105_v2, %s133_s14  ;;  %s135_s20 = smov 96   ;;  %v106_v5 = vld [vmem:[%s207_s0 + $0xa] sm:$0x1]   ;;  %s136_s23 = smov 80   ;;  %v107_v6 = vld [vmem:[%s207_s0 + $0x9] sm:$0x1]  }
   0x4   :  { %v108_v7 = vld [vmem:[%s207_s0 + $0x8] sm:$0x1]   ;;  %s137_s28 = smov 72   ;;  %s138_s29 = smov 64   ;;  %v109_v8 = vld [vmem:[%s207_s0 + $0x7] sm:$0x1]  }
   0x5   :  { %s139_s3 = smov 56   ;;  %v110_v9 = vld [vmem:[%s207_s0 + $0x6] sm:$0x1]   ;;  %v111_v10 = vld [vmem:[%s207_s0 + $0x5] sm:$0x1]   ;;  %s140_s8 = smov 48  }
   0x6   :  { %s141_s9 = smov 40   ;;  %v112_v11 = vld [vmem:[%s207_s0 + $0x4] sm:$0x1]   ;;  %s142_s12 = smov 32   ;;  %v113_v12 = vld [vmem:[%s207_s0 + $0x3] sm:$0x1]  }
   0x7   :  { %v114_v13 = vld [vmem:[%s207_s0 + $0x2] sm:$0x1]   ;;  %s143_s17 = smov 24   ;;  %s144_s18 = smov 16   ;;  %v115_v14 = vld [vmem:[%s207_s0 + $0x1] sm:$0x1]  }
   0x8   :  { %s145_s21 = smov 8   ;;  %v2_v15 = vld [vmem:[%s207_s0] sm:$0x1]   ;;  %vm27_vm4 = vcmask 851712   ;;  %vm33_vm5 = vcmask 786112   ;;  %vm39_vm6 = vcmask 720512  }
   0x9   :  { %4 = vst.msk [vmem:[#allocation0] sm:$0x1] %vm3_vm0, %v2_v15   ;;  %vm45_vm7 = vcmask 654912   ;;  %vm51_vm8 = vcmask 589312   ;;  %vm57_vm9 = vcmask 523712   ;;  %vm63_vm10 = vcmask 458112  }
   0xa   :  { %13 = vrot.lane.b32.xlu0 %v102_v3, %s134_s19  ;;  %25 = vrot.lane.b32.xlu1 %v104_v4, %s135_s20  ;;  %vm69_vm11 = vcmask 392512   ;;  %vm75_vm12 = vcmask 326912   ;;  %vm81_vm13 = vcmask 261312   ;;  %vm87_vm14 = vcmask 195712  }
   0xb   :  { %37 = vrot.lane.b32.xlu2 %v106_v5, %s136_s23  ;;  %vm93_vm15 = vcmask 130112  }
  0x12   :  { %43 = vrot.lane.b32.xlu0 %v107_v6, %s137_s28  ;;  %49 = vrot.lane.b32.xlu1 %v108_v7, %s138_s29 }
  0x13   :  { %55 = vrot.lane.b32.xlu2 %v109_v8, %s139_s3 }
  0x1a   :  { %61 = vrot.lane.b32.xlu0 %v110_v9, %s140_s8  ;;  %67 = vrot.lane.b32.xlu1 %v111_v10, %s141_s9 }
  0x1b   :  { %73 = vrot.lane.b32.xlu2 %v112_v11, %s142_s12 }
  0x22   :  { %79 = vrot.lane.b32.xlu0 %v113_v12, %s143_s17  ;;  %85 = vrot.lane.b32.xlu1 %v114_v13, %s144_s18 }
  0x23   :  { %91 = vrot.lane.b32.xlu2 %v115_v14, %s145_s21 }
  0x5d   :  { %v32_v16 = vpop.permute.xlu2 %31  }
  0x65   :  { %v38_v17 = vpop.permute.xlu2 %37  }
  0x6d   :  { %v56_v18 = vpop.permute.xlu2 %55  }
  0x74   :  { %v8_v19 = vpop.permute.xlu0 %7   ;;  %v20_v20 = vpop.permute.xlu1 %19  }
  0x75   :  { %10 = vst.msk [vmem:[#allocation0] sm:$0x1] %vm9_vm1, %v8_v19   ;;  %v74_v21 = vpop.permute.xlu2 %73  }
  0x7c   :  { %v14_v22 = vpop.permute.xlu0 %13   ;;  %v26_v23 = vpop.permute.xlu1 %25  }
  0x7d   :  { %16 = vst.msk [vmem:[#allocation0] sm:$0x1] %vm15_vm2, %v14_v22   ;;  %v92_v24 = vpop.permute.xlu2 %91  }
  0x7e   :  { %22 = vst.msk [vmem:[#allocation0] sm:$0x1] %vm21_vm3, %v20_v20  }
  0x7f   :  { %28 = vst.msk [vmem:[#allocation0] sm:$0x1] %vm27_vm4, %v26_v23  }
  0x80   :  { %34 = vst.msk [vmem:[#allocation0] sm:$0x1] %vm33_vm5, %v32_v16  }
  0x81   :  { %40 = vst.msk [vmem:[#allocation0] sm:$0x1] %vm39_vm6, %v38_v17  }
  0x84   :  { %v44_v25 = vpop.permute.xlu0 %43   ;;  %v50_v26 = vpop.permute.xlu1 %49  }
  0x85   :  { %46 = vst.msk [vmem:[#allocation0] sm:$0x1] %vm45_vm7, %v44_v25  }
  0x86   :  { %52 = vst.msk [vmem:[#allocation0] sm:$0x1] %vm51_vm8, %v50_v26  }
  0x87   :  { %58 = vst.msk [vmem:[#allocation0] sm:$0x1] %vm57_vm9, %v56_v18  }
  0x8c   :  { %v62_v27 = vpop.permute.xlu0 %61   ;;  %v68_v28 = vpop.permute.xlu1 %67  }
  0x8d   :  { %64 = vst.msk [vmem:[#allocation0] sm:$0x1] %vm63_vm10, %v62_v27  }
  0x8e   :  { %70 = vst.msk [vmem:[#allocation0] sm:$0x1] %vm69_vm11, %v68_v28  }
  0x8f   :  { %76 = vst.msk [vmem:[#allocation0] sm:$0x1] %vm75_vm12, %v74_v21  }
  0x94   :  { %v80_v29 = vpop.permute.xlu0 %79   ;;  %v86_v30 = vpop.permute.xlu1 %85  }
  0x95   :  { %82 = vst.msk [vmem:[#allocation0] sm:$0x1] %vm81_vm13, %v80_v29  }
  0x96   :  { %88 = vst.msk [vmem:[#allocation0] sm:$0x1] %vm87_vm14, %v86_v30  }
  0x97   :  { %94 = vst.msk [vmem:[#allocation0] sm:$0x1] %vm93_vm15, %v92_v24  }
  0x9e   :  { %v97_v31 = vld [vmem:[#allocation0] sm:$0x1] }
  0x9f   :  { %100 = vst [vmem:[%s208_s1] sm:$0x1] %v97_v31 }

// kernel: upsample_bn_forward.1
= control target key start
LH: loop header
LB: loop body
LE: loop exit
PB: predicated region body
PF: predicated region fallthrough
CT: control target
= control target key end

     0   :  { %s1384_s24 = smov 0   ;;  %s1581_s0 = inlined_call_operand.vmem [shape: bf16[2,16,128], index: 0, kind: input, shape index: {}]   ;;  %s1582_s1 = inlined_call_operand.vmem [shape: bf16[3,128,128], index: 1, kind: input, shape index: {}]   ;;  %s1583_s2 = inlined_call_operand.vmem [shape: f32[1,128], index: 2, kind: input, shape index: {}]   ;;  %s1584_s3 = inlined_call_operand.vmem [shape: f32[1,128], index: 3, kind: input, shape index: {}]   ;;  %s1585_s4 = inlined_call_operand.vmem [shape: bf16[3,128,128], index: 4, kind: input, shape index: {}]   ;;  %s1586_s5 = inlined_call_operand.vmem [shape: f32[1,128], index: 5, kind: input, shape index: {}]   ;;  %s1587_s6 = inlined_call_operand.vmem [shape: f32[1,128], index: 6, kind: input, shape index: {}]   ;;  %s1588_s7 = inlined_call_operand.vmem [shape: f32[2,16,128], index: 7, kind: output, shape index: {}]  }
   0x1 LB: > { %s987_s25 = sadd.s32 4294967295, %s1342_s24   ;;  %p991_p0 = scmp.ge.s32.totalorder %s1342_s24, 1  ;;  %s1342_s24 = sphi %s1384_s24, %s17_s24  }
   0x2   : > { %p237_p1 = scmp.lt.s32.totalorder %s1342_s24, 3 }
   0x4   : > { %p238_p2 = pnand %p991_p0, %p237_p1 }
   0x5   : > { %p269_p3 = scmp.lt.s32.totalorder (!%p238_p2), %s987_s25, 1 }
   0x6   : > { %241 = sbr.rel (%p238_p2) target bundleno = 361 (0x169), region = 48 }
   0xb   : > { %v1279_v0 = vld [vmem:[%s1582_s1 + $0x78] sm:$0xff]  ;;  %v1278_v3 = vld [vmem:[%s1582_s1 + $0x70] sm:$0xff]  ;;  %s1594_s25 = smov (!%p269_p3, %s987_s25), 1  ;;  %vm280_vm0 = vcmask 1043459   ;;  %vm281_vm1 = vsmask.f32 7950 }
   0xc   : > { %v1271_v1 = vld [vmem:[%s1582_s1 + $0x38] sm:$0xff]  ;;  %392 = vmatpush.bf16.msra.mxu0 %v1279_v0  ;;  %v1270_v4 = vld [vmem:[%s1582_s1 + $0x30] sm:$0xff]  ;;  %s1262_s15 = sshll.u32 %s1594_s25, 3  ;;  %v1277_v6 = vld [vmem:[%s1582_s1 + $0x68] sm:$0xff]  ;;  %vm286_vm2 = vcmask 1040384   ;;  %s1263_s29 = sshll.u32 %s1594_s25, 4 }
   0xd   : > { %v1288_v2 = vld [vmem:[%s1582_s1 + $0xb8] sm:$0xff]  ;;  %477 = vmatpush.bf16.msra.mxu1 %v1271_v1  ;;  %v1287_v5 = vld [vmem:[%s1582_s1 + $0xb0] sm:$0xff]  ;;  %s273_s18 = scalar_lea.vmem %s1581_s0, %s1262_s15  ;;  %v1269_v7 = vld [vmem:[%s1582_s1 + $0x28] sm:$0xff]  ;;  %vm287_vm3 = vsmask.f32 256  ;;  %s278_s9 = scalar_lea.vmem %s1588_s7, %s1263_s29 }
   0xe   : > { %581 = vmatpush.bf16.msra.mxu2 %v1288_v2  ;;  %v1286_v8 = vld [vmem:[%s1582_s1 + $0xa8] sm:$0xff]  ;;  %v1276_v9 = vld [vmem:[%s1582_s1 + $0x60] sm:$0xff]  ;;  %vm1431_vm4 = vmand %vm280_vm0, %vm281_vm1  ;;  %vm410_vm6 = vsmask.f32 4352  ;;  %vm519_vm7 = vsmask.f32 7424 }
   0xf   : > { %v1268_v10 = vld [vmem:[%s1582_s1 + $0x20] sm:$0xff]  ;;  %vm1437_vm5 = vmand %vm286_vm2, %vm287_vm3  ;;  %v289_v16 = vld [vmem:[#allocation2 + $0xc] sm:$0x1] }
  0x10   : > { %393 = vmatpush.bf16.msra.mxu0 %v1278_v3  ;;  %v283_v12 = vld [vmem:[#allocation2] sm:$0x8]  ;;  %v290_v18 = vsel %vm1437_vm5, 0, %v289_v16  ;;  %v1275_v19 = vld [vmem:[%s1582_s1 + $0x58] sm:$0xff]  ;;  %v1274_v27 = vld [vmem:[%s1582_s1 + $0x50] sm:$0xff] }
  0x11   : > { %478 = vmatpush.bf16.msra.mxu1 %v1270_v4  ;;  %v298_v13 = vld [vmem:[%s273_s18] sm:$0xff]   ;;  %v284_v14 = vsel %vm1431_vm4, 0, %v283_v12  ;;  %291 = vst [vmem:[#allocation2 + $0xc] sm:$0x1] %v290_v18  ;;  %v1267_v20 = vld [vmem:[%s1582_s1 + $0x18] sm:$0xff]  ;;  %v1266_v28 = vld [vmem:[%s1582_s1 + $0x10] sm:$0xff] }
  0x12   : > { %582 = vmatpush.bf16.msra.mxu2 %v1287_v5  ;;  %300 = vst [vmem:[#allocation2 + $0x4] sm:$0xff] %v298_v13   ;;  %v1285_v17 = vld [vmem:[%s1582_s1 + $0xa0] sm:$0xff]  ;;  %v1284_v21 = vld [vmem:[%s1582_s1 + $0x98] sm:$0xff]  ;;  %v1283_v30 = vld [vmem:[%s1582_s1 + $0x90] sm:$0xff] }
  0x13   : > { %285 = vst [vmem:[#allocation2] sm:$0x8] %v284_v14  ;;  %v1273_v38 = vld [vmem:[%s1582_s1 + $0x48] sm:$0xff]  ;;  %v1272_v50 = vld [vmem:[%s1582_s1 + $0x40] sm:$0xff]  ;;  %v1304_v59 = vld [vmem:[%s1585_s4 + $0x78] sm:$0xff] }
  0x14   : > { %394 = vmatpush.bf16.msra.mxu0 %v1277_v6  ;;  %v1265_v39 = vld [vmem:[%s1582_s1 + $0x8] sm:$0xff]  ;;  %v1264_v51 = vld [vmem:[%s1582_s1] sm:$0xff]  ;;  %709 = vmatpush.bf16.msra.mxu3 %v1304_v59  ;;  %v1303_v60 = vld [vmem:[%s1585_s4 + $0x70] sm:$0xff] }
  0x15   : > { %479 = vmatpush.bf16.msra.mxu1 %v1269_v7  ;;  %v1282_v43 = vld [vmem:[%s1582_s1 + $0x88] sm:$0xff]  ;;  %v1281_v54 = vld [vmem:[%s1582_s1 + $0x80] sm:$0xff]  ;;  %v1313_v61 = vld [vmem:[%s1585_s4 + $0xb8] sm:$0xff] }
  0x16   : > { %583 = vmatpush.bf16.msra.mxu2 %v1286_v8  ;;  %v1296_v62 = vld [vmem:[%s1585_s4 + $0x38] sm:$0xff]  ;;  %v1302_v63 = vld [vmem:[%s1585_s4 + $0x68] sm:$0xff]  ;;  %v1312_v0 = vld [vmem:[%s1585_s4 + $0xb0] sm:$0xff] }
  0x17   : > { %v1295_v1 = vld [vmem:[%s1585_s4 + $0x30] sm:$0xff]  ;;  %v1301_v2 = vld [vmem:[%s1585_s4 + $0x60] sm:$0xff]  ;;  %v1311_v3 = vld [vmem:[%s1585_s4 + $0xa8] sm:$0xff] }
  0x18   : > { %395 = vmatpush.bf16.msra.mxu0 %v1276_v9  ;;  %v493_v29 = vld [vmem:[#allocation2 + $0xc] sm:$0x1]  ;;  %710 = vmatpush.bf16.msra.mxu3 %v1303_v60  ;;  %v1300_v5 = vld [vmem:[%s1585_s4 + $0x58] sm:$0xff]  ;;  %v1310_v6 = vld [vmem:[%s1585_s4 + $0xa0] sm:$0xff] }
  0x19   : > { %480 = vmatpush.bf16.msra.mxu1 %v1268_v10  ;;  %v303_v22 = vld [vmem:[#allocation2 + $0x4] sm:$0xff]   ;;  %v516_v32 = vunpack.c.l.b16 %v493_v29  ;;  %v295_v7 = vld [vmem:[#allocation3 + $0xc] sm:$0x1]  ;;  %v292_v9 = vld [vmem:[#allocation3] sm:$0x8] }
  0x1a   : > { %584 = vmatpush.bf16.msra.mxu2 %v1285_v17  ;;  %v1339_v23 = vld [vmem:[#allocation2] sm:$0xf0]   ;;  %v1336_v25 = vld [vmem:[#allocation2] sm:$0x8]  ;;  %v341_v26 = vunpack.c.h.b16 %v303_v22  ;;  %v1294_v4 = vld [vmem:[%s1585_s4 + $0x28] sm:$0xff]  ;;  %v296_v10 = vsel %vm1437_vm5, 0, %v295_v7 }
  0x1b   : > { %v1280_v24 = vld [vmem:[#allocation2 + $0x4] sm:$0xff]  ;;  %v1337_v34 = vor.u32 %v1339_v23, %v1336_v25  ;;  %v518_v37 = vpack.c.b16 %v516_v32, %v516_v32  ;;  %v1299_v12 = vld [vmem:[%s1585_s4 + $0x50] sm:$0xff]  ;;  %v1309_v13 = vld [vmem:[%s1585_s4 + $0x98] sm:$0xff]  ;;  %v293_v14 = vsel %vm1431_vm4, 0, %v292_v9  ;;  %297 = vst [vmem:[#allocation3 + $0xc] sm:$0x1] %v296_v10 }
  0x1c   : > { %396 = vmatpush.bf16.msra.mxu0 %v1275_v19  ;;  %v409_v31 = vpack.c.b16 %v341_v26, %v341_v26  ;;  %v523_v33 = vshll.u32 %v1280_v24, 16  ;;  %v521_v42 = vshrl.u32 %v1280_v24, 16  ;;  %711 = vmatpush.bf16.msra.mxu3 %v1302_v63  ;;  %v1293_v8 = vld [vmem:[%s1585_s4 + $0x20] sm:$0xff]  ;;  %v1292_v16 = vld [vmem:[%s1585_s4 + $0x18] sm:$0xff]  ;;  %294 = vst [vmem:[#allocation3] sm:$0x8] %v293_v14 }
  0x1d   : > { %481 = vmatpush.bf16.msra.mxu1 %v1267_v20  ;;  %v412_v40 = vshrl.u32 %v1337_v34, 16  ;;  %v415_v41 = vshll.u32 %v1337_v34, 16  ;;  %v528_v47 = vshll.u32 %v518_v37, 16  ;;  %v1298_v15 = vld [vmem:[%s1585_s4 + $0x48] sm:$0xff]  ;;  %v1308_v17 = vld [vmem:[%s1585_s4 + $0x90] sm:$0xff]  ;;  %v1297_v18 = vld [vmem:[%s1585_s4 + $0x40] sm:$0xff] }
  0x1e   : > { %585 = vmatpush.bf16.msra.mxu2 %v1284_v21  ;;  %v420_v35 = vshrl.u32 %v409_v31, 16  ;;  %v423_v36 = vshll.u32 %v409_v31, 16  ;;  %v525_v46 = vrot.slane %v523_v33, 1  ;;  %v1291_v11 = vld [vmem:[%s1585_s4 + $0x10] sm:$0xff]  ;;  %v1307_v19 = vld [vmem:[%s1585_s4 + $0x88] sm:$0xff]  ;;  %v1306_v25 = vld [vmem:[%s1585_s4 + $0x80] sm:$0xff] }
  0x1f   : > { %v414_v48 = vrot.slane %v412_v40, 3  ;;  %v417_v49 = vrot.slane %v415_v41, 4  ;;  %v530_v56 = vrot.slane %v528_v47, 1  ;;  %v1290_v23 = vld [vmem:[%s1585_s4 + $0x8] sm:$0xff]  ;;  %v1322_v24 = vld [vmem:[%s1583_s2] ss:$0 sm:$0xff] }
  0x20   : > { %397 = vmatpush.bf16.msra.mxu0 %v1274_v27  ;;  %v422_v44 = vrot.slane %v420_v35, 3  ;;  %v425_v45 = vrot.slane %v423_v36, 4  ;;  %v526_v55 = vor.u32 %v525_v46, %v521_v42  ;;  %712 = vmatpush.bf16.msra.mxu3 %v1301_v2  ;;  %v1289_v29 = vld [vmem:[%s1585_s4] sm:$0xff] }
  0x21   : > { %482 = vmatpush.bf16.msra.mxu1 %v1266_v28  ;;  %v418_v52 = vor.u32 %v417_v49, %v414_v48  ;;  %v1323_v28 = vld [vmem:[%s1584_s3] ss:$0 sm:$0xff] }
  0x22   : > { %586 = vmatpush.bf16.msra.mxu2 %v1283_v30  ;;  %v426_v53 = vor.u32 %v425_v45, %v422_v44  ;;  %v531_v58 = vsel %vm519_vm7, %v526_v55, %v530_v56  ;;  %v1324_v14 = vld [vmem:[%s1586_s5] ss:$0 sm:$0xff] }
  0x23   : > { %v1328_v47 = vld [vmem:[#allocation3] sm:$0x8] }
  0x24   : > { %398 = vmatpush.bf16.msra.mxu0 %v1273_v38  ;;  %v427_v57 = vsel %vm410_vm6, %v418_v52, %v426_v53  ;;  %713 = vmatpush.bf16.msra.mxu3 %v1300_v5 }
  0x25   : > { %483 = vmatpush.bf16.msra.mxu1 %v1265_v39 }
  0x26   : > { %587 = vmatpush.bf16.msra.mxu2 %v1282_v43  ;;  %v809_v43 = vld [vmem:[#allocation3 + $0xc] sm:$0x1] }
  0x27   : > { %v832_v46 = vunpack.c.l.b16 %v809_v43 }
  0x28   : > { %399 = vmatpush.bf16.msra.mxu0 %v1272_v50  ;;  %714 = vmatpush.bf16.msra.mxu3 %v1299_v12 }
  0x29   : > { %484 = vmatpush.bf16.msra.mxu1 %v1264_v51  ;;  %v834_v48 = vpack.c.b16 %v832_v46, %v832_v46 }
  0x2a   : > { %588 = vmatpush.bf16.msra.mxu2 %v1281_v54 }
  0x2b   : > { %400 = vmatmul.bf16.vlgmr.msra.gmra.mxu0 %v303_v22  ;;  %v843_v52 = vshll.u32 %v834_v48, 16 }
  0x2c   : > { %485 = vmatmul.bf16.vlgmr.msra.gmra.mxu1 %v427_v57  ;;  %793 = vmatpush.bf16.msrb.mxu0 %v1296_v62 }
  0x2d   : > { %589 = vmatmul.bf16.vlgmr.msra.gmra.mxu2 %v531_v58  ;;  %896 = vmatpush.bf16.msrb.mxu1 %v1313_v61  ;;  %v845_v59 = vrot.slane %v843_v52, 1 }
  0x2e   : > { %715 = vmatpush.bf16.msra.mxu3 %v1298_v15  ;;  %v1325_v15 = vld [vmem:[%s1587_s6] ss:$0 sm:$0xff] }
  0x30   : > { %794 = vmatpush.bf16.msrb.mxu0 %v1295_v1 }
  0x31   : > { %897 = vmatpush.bf16.msrb.mxu1 %v1312_v0 }
  0x32   : > { %716 = vmatpush.bf16.msra.mxu3 %v1297_v18 }
  0x34   : > { %795 = vmatpush.bf16.msrb.mxu0 %v1294_v4 }
  0x35   : > { %898 = vmatpush.bf16.msrb.mxu1 %v1311_v3 }
  0x38   : > { %796 = vmatpush.bf16.msrb.mxu0 %v1293_v8 }
  0x39   : > { %899 = vmatpush.bf16.msrb.mxu1 %v1310_v6 }
  0x3c   : > { %797 = vmatpush.bf16.msrb.mxu0 %v1292_v16 }
  0x3d   : > { %900 = vmatpush.bf16.msrb.mxu1 %v1309_v13 }
  0x40   : > { %798 = vmatpush.bf16.msrb.mxu0 %v1291_v11 }
  0x41   : > { %901 = vmatpush.bf16.msrb.mxu1 %v1308_v17 }
  0x44   : > { %799 = vmatpush.bf16.msrb.mxu0 %v1290_v23 }
  0x45   : > { %902 = vmatpush.bf16.msrb.mxu1 %v1307_v19 }
  0x48   : > { %800 = vmatpush.bf16.msrb.mxu0 %v1289_v29 }
  0x49   : > { %903 = vmatpush.bf16.msrb.mxu1 %v1306_v25 }
  0xa8   : > { %v401_v20 = vpop.f32.mrf.mxu0 }
  0xa9   : > { %v486_v21 = vpop.f32.mrf.mxu1 }
  0xaa   : > { %v487_v22 = vadd.f32 %v486_v21, %v401_v20 }
  0xb0   : > { %v590_v26 = vpop.f32.mrf.mxu2  ;;  %v403_v31 = vpop.f32.mrf.mxu0 }
  0xb1   : > { %v595_v27 = vadd.f32 %v590_v26, %v487_v22  ;;  %v488_v32 = vpop.f32.mrf.mxu1 }
  0xb2   : > { %v489_v35 = vadd.f32 %v488_v32, %v403_v31 }
  0xb3   : > { %v601_v30 = vmul.f32 %v1322_v24, %v595_v27 }
  0xb5   : > { %v607_v33 = vadd.f32 %v1323_v28, %v601_v30 }
  0xb7   : > { %vm609_vm8 = vcmp.ge.f32.partialorder %v607_v33, 0.0  ;;  %v611_v34 = vmul.f32 0.01, %v607_v33 }
  0xb8   : > { %v592_v36 = vpop.f32.mrf.mxu2 }
  0xb9   : > { %v613_v37 = vsel %vm609_vm8, %v607_v33, %v611_v34  ;;  %v596_v38 = vadd.f32 %v592_v36, %v489_v35 }
  0xba   : > { %v615_v39 = vpack.c.bf16 %v613_v37, %v613_v37 }
  0xbb   : > { %v602_v40 = vmul.f32 %v1322_v24, %v596_v38 }
  0xbc   : > { %617 = vst [vmem:[#allocation3 + $0x4] sm:$0xf] %v615_v39 }
  0xbd   : > { %v608_v41 = vadd.f32 %v1323_v28, %v602_v40 }
  0xbf   : > { %vm610_vm9 = vcmp.ge.f32.partialorder %v608_v41, 0.0  ;;  %v612_v42 = vmul.f32 0.01, %v608_v41 }
  0xc1   : > { %v614_v44 = vsel %vm610_vm9, %v608_v41, %v612_v42 }
  0xc2   : > { %v616_v45 = vpack.c.bf16 %v614_v44, %v614_v44 }
  0xc3   : > { %v1338_v50 = vld [vmem:[#allocation3] sm:$0xf0]  }
  0xc4   : > { %618 = vst [vmem:[#allocation3 + $0x8] sm:$0xf] %v616_v45  ;;  %v1329_v55 = vor.u32 %v1338_v50, %v1328_v47 }
  0xc6   : > { %v728_v60 = vshrl.u32 %v1329_v55, 16  ;;  %v731_v61 = vshll.u32 %v1329_v55, 16 }
  0xc8   : > { %v730_v1 = vrot.slane %v728_v60, 3  ;;  %v733_v2 = vrot.slane %v731_v61, 4 }
  0xca   : > { %v734_v6 = vor.u32 %v733_v2, %v730_v1 }
  0xcb   : > { %v620_v49 = vld [vmem:[#allocation3 + $0x4] sm:$0xff]  }
  0xcc   : > { %v1305_v51 = vld [vmem:[#allocation3 + $0x4] sm:$0xff]  ;;  %v658_v53 = vunpack.c.h.b16 %v620_v49  ;;  %717 = vmatmul.bf16.vlgmr.msra.gmra.mxu3 %v620_v49 }
  0xcd   : > { %v838_v54 = vshll.u32 %v1305_v51, 16  ;;  %v836_v57 = vshrl.u32 %v1305_v51, 16 }
  0xce   : > { %v726_v56 = vpack.c.b16 %v658_v53, %v658_v53 }
  0xcf   : > { %v840_v58 = vrot.slane %v838_v54, 1 }
  0xd0   : > { %v736_v62 = vshrl.u32 %v726_v56, 16  ;;  %v739_v63 = vshll.u32 %v726_v56, 16 }
  0xd1   : > { %v841_v0 = vor.u32 %v840_v58, %v836_v57 }
  0xd2   : > { %v738_v3 = vrot.slane %v736_v62, 3  ;;  %v741_v4 = vrot.slane %v739_v63, 4 }
  0xd3   : > { %v846_v5 = vsel %vm519_vm7, %v841_v0, %v845_v59 }
  0xd4   : > { %904 = vmatmul.bf16.vlgmr.msrb.gmra.mxu1 %v846_v5  ;;  %v742_v7 = vor.u32 %v741_v4, %v738_v3 }
  0xd6   : > { %v743_v8 = vsel %vm410_vm6, %v734_v6, %v742_v7 }
  0xd7   : > { %801 = vmatmul.bf16.vlgmr.msrb.gmra.mxu0 %v743_v8 }
 0x14f   : > { %v718_v9 = vpop.f32.mrf.mxu3 }
 0x151   : > { %v905_v10 = vpop.f32.mrf.mxu1 }
 0x154   : > { %v802_v12 = vpop.f32.mrf.mxu0 }
 0x155   : > { %v803_v13 = vadd.f32 %v802_v12, %v718_v9 }
 0x157   : > { %v910_v16 = vadd.f32 %v905_v10, %v803_v13  ;;  %v720_v18 = vpop.f32.mrf.mxu3 }
 0x159   : > { %v916_v17 = vmul.f32 %v1324_v14, %v910_v16  ;;  %v907_v22 = vpop.f32.mrf.mxu1 }
 0x15b   : > { %v922_v11 = vadd.f32 %v1325_v15, %v916_v17 }
 0x15c   : > { %v804_v19 = vpop.f32.mrf.mxu0 }
 0x15d   : > { %vm924_vm10 = vcmp.ge.f32.partialorder %v922_v11, 0.0  ;;  %v926_v20 = vmul.f32 0.01, %v922_v11  ;;  %v805_v21 = vadd.f32 %v804_v19, %v720_v18 }
 0x15f   : > { %v928_v23 = vsel %vm924_vm10, %v922_v11, %v926_v20  ;;  %v911_v24 = vadd.f32 %v907_v22, %v805_v21 }
 0x160   : > { %930 = vst [vmem:[%s278_s9] sm:$0xff] %v928_v23 }
 0x161   : > { %v917_v25 = vmul.f32 %v1324_v14, %v911_v24 }
 0x163   : > { %v923_v26 = vadd.f32 %v1325_v15, %v917_v25 }
 0x165   : > { %vm925_vm11 = vcmp.ge.f32.partialorder %v923_v26, 0.0  ;;  %v927_v27 = vmul.f32 0.01, %v923_v26 }
 0x167   : > { %v929_v28 = vsel %vm925_vm11, %v923_v26, %v927_v27 }
 0x168   : > { %931 = vst [vmem:[%s278_s9 + $0x8] sm:$0xff] %v929_v28 }
 0x169 PF: > { %s17_s24 = sadd.s32 1, %s1342_s24  }
 0x16a   : > { %p14_p4 = scmp.ge.s32.totalorder %s17_s24, 4  }
 0x16c   :  { %16 = sbr.rel (!%p14_p4) target bundleno = 1 (0x1), region = 82 }

</bundles_post_ra>
